<compile_context>
chip_gen: v7x
topology: tpu7x:2x2x1
jax: 0.10.0
libtpu: 0.0.40
codegen_flags: <defaults>
</compile_context>

<pallas_src>
import functools

import jax
import jax.numpy as jnp
from jax.experimental import pallas as pl
from jax.experimental.pallas import tpu as pltpu


def _round_up(v, m):
    return ((v + m - 1) // m) * m


# Scoped-VMEM limit for every kernel: above the 16 MiB (v5e) / 32 MiB (v6e,v7x)
# defaults, safely below v7x's 64 MiB physical VMEM.
_VMEM_LIMIT = 48 * 1024 * 1024

# Row tile for the flattened (1x1-conv / gathered) path.  128 keeps the demo
# multi-tile; for real resolutions use 256-1024 on v5e/v6e and ~half on v7x.
_FLAT_ROW_TILE = 128

_LEAKY_SLOPE = 0.01


# ----------------------------------------------------------------------------
# Shared fused epilogue (runs on the f32 accumulator, in-register)
# ----------------------------------------------------------------------------

def _epilogue(y, act, gdn_mode, gT_ref, beta_ref, res_mode, res_refs):
    if act == "relu":
        y = jnp.maximum(y, 0.0)
    elif act == "leaky":
        y = jnp.where(y >= 0.0, y, _LEAKY_SLOPE * y)
    if gdn_mode is not None:
        # norm_c = sum_j gamma[c, j] * y_j^2 + beta_c   (gamma passed transposed)
        norm = jnp.dot((y * y).astype(jnp.bfloat16), gT_ref[...],
                       preferred_element_type=jnp.float32) + beta_ref[...]
        norm = jnp.maximum(norm, 1e-10)   # gamma/beta are non-negative in compressai
        y = y * (jnp.sqrt(norm) if gdn_mode == "igdn" else jax.lax.rsqrt(norm))
    if res_mode == "add":
        y = y + res_refs[0][0]
    elif res_mode == "add_relu":
        y = jnp.maximum(y + res_refs[0][0], 0.0)
    elif res_mode == "attn":                      # out = x + a * sigmoid(conv(b))
        identity, gate = res_refs[0][0], res_refs[1][0]
        sig = pl.reciprocal(1.0 + jnp.exp(-y), approx=True)   # exp on EUP + vrcp
        y = identity + gate * sig
    return y


# ----------------------------------------------------------------------------
# Kernel 1: flattened matmul path (1x1 convs, gathered tiny stages), M-tiled
# ----------------------------------------------------------------------------

def _flat_conv_kernel(*refs, act, gdn_mode, res_mode, n_res):
    idx = 0
    x_ref = refs[idx]; idx += 1
    w_ref = refs[idx]; idx += 1
    b_ref = refs[idx]; idx += 1
    gT_ref = beta_ref = None
    if gdn_mode is not None:
        gT_ref, beta_ref = refs[idx], refs[idx + 1]
        idx += 2
    res_refs = refs[idx:idx + n_res]
    o_ref = refs[idx + n_res]

    y = jnp.dot(x_ref[0].astype(jnp.bfloat16), w_ref[...],
                preferred_element_type=jnp.float32) + b_ref[...]
    y = _epilogue(y, act, gdn_mode, gT_ref, beta_ref, res_mode, res_refs)
    o_ref[0] = y


def _launch_flat(x_kern, w_eff, b, cout, *, act, gdn, gdn_mode, res_mode, res_kern):
    B, m, K = x_kern.shape
    tm = min(_FLAT_ROW_TILE, _round_up(m, 8))
    mp = _round_up(m, tm)
    if mp != m:
        x_kern = jnp.pad(x_kern, ((0, 0), (0, mp - m), (0, 0)))
        res_kern = tuple(jnp.pad(r, ((0, 0), (0, mp - m), (0, 0)))
                         for r in res_kern)
    n_mt = mp // tm

    kern = functools.partial(_flat_conv_kernel, act=act, gdn_mode=gdn_mode,
                             res_mode=res_mode, n_res=len(res_kern))
    in_specs = [pl.BlockSpec((1, tm, K), lambda i, j: (i, j, 0)),
                pl.BlockSpec((K, cout), lambda i, j: (0, 0)),
                pl.BlockSpec((1, cout), lambda i, j: (0, 0))]
    args = [x_kern, w_eff.astype(jnp.bfloat16), b.reshape(1, cout)]
    if gdn_mode is not None:
        in_specs += [pl.BlockSpec((cout, cout), lambda i, j: (0, 0)),
                     pl.BlockSpec((1, cout), lambda i, j: (0, 0))]
        args += [gdn["gamma"].T.astype(jnp.bfloat16), gdn["beta"].reshape(1, cout)]
    for r in res_kern:
        in_specs.append(pl.BlockSpec((1, tm, cout), lambda i, j: (i, j, 0)))
        args.append(r)

    flops = 2 * B * mp * K * cout
    if gdn_mode is not None:
        flops += 2 * B * mp * cout * cout
    trans = B * mp * cout if (gdn_mode is not None or res_mode == "attn") else 0
    bytes_acc = (4 * (x_kern.size + B * mp * cout) + 2 * w_eff.size
                 + 4 * sum(int(r.size) for r in res_kern))

    out = pl.pallas_call(
        kern,
        out_shape=jax.ShapeDtypeStruct((B, mp, cout), jnp.float32),
        grid=(B, n_mt),
        in_specs=in_specs,
        out_specs=pl.BlockSpec((1, tm, cout), lambda i, j: (i, j, 0)),
        compiler_params=pltpu.CompilerParams(
            dimension_semantics=("parallel", "parallel"),
            vmem_limit_bytes=_VMEM_LIMIT),
        cost_estimate=pl.CostEstimate(flops=int(flops), transcendentals=int(trans),
                                      bytes_accessed=int(bytes_acc)),
    )(*args)
    return out[:, :m, :]


# ----------------------------------------------------------------------------
# Kernel 2: spatial conv path (3x3 stride-1 with in-kernel halo pad, or
#            2x2 dense conv over a space-to-depth input for stride-2 3x3).
#            Per-tap MXU accumulation -- no 9x im2col concat.
# ----------------------------------------------------------------------------

def _spatial_conv_kernel(*refs, kk, Ho, Wo, pad, act, gdn_mode, res_mode, n_res):
    idx = 0
    x_ref = refs[idx]; idx += 1
    w_ref = refs[idx]; idx += 1
    b_ref = refs[idx]; idx += 1
    gT_ref = beta_ref = None
    if gdn_mode is not None:
        gT_ref, beta_ref = refs[idx], refs[idx + 1]
        idx += 2
    res_refs = refs[idx:idx + n_res]; idx += n_res
    o_ref = refs[idx]; idx += 1
    pad_ref = refs[idx] if pad else None

    cin = x_ref.shape[-1]
    cout = o_ref.shape[-1]
    m = Ho * Wo
    k = 3 if kk == 9 else 2

    if pad:
        # Zero-padded halo built in VMEM (no HBM jnp.pad).  Interior stored at
        # an aligned sublane offset (8) so the store is unmasked along sublanes.
        pad_ref[...] = jnp.zeros_like(pad_ref)
        pad_ref[1:Ho + 1, 8:8 + Wo, :] = x_ref[0]

        def tap(dy, dx):
            return pad_ref[dy:dy + Ho, 7 + dx:7 + dx + Wo, :]
    else:
        def tap(dy, dx):
            return x_ref[0, dy:dy + Ho, dx:dx + Wo, :]

    acc = jnp.zeros((m, cout), jnp.float32) + b_ref[...]
    t = 0
    for dy in range(k):
        for dx in range(k):
            a = tap(dy, dx).reshape(m, cin).astype(jnp.bfloat16)
            acc = acc + jnp.dot(a, w_ref[t], preferred_element_type=jnp.float32)
            t += 1

    y = _epilogue(acc, act, gdn_mode, gT_ref, beta_ref, res_mode, res_refs)
    o_ref[0] = y


def _launch_spatial(x_kern, w_taps, b, Ho, Wo, cout, *, pad, act, gdn, gdn_mode,
                    res_mode, res_kern):
    B, Hi, Wi, cin_e = x_kern.shape
    kk = w_taps.shape[0]
    m = Ho * Wo

    kern = functools.partial(_spatial_conv_kernel, kk=kk, Ho=Ho, Wo=Wo, pad=pad,
                             act=act, gdn_mode=gdn_mode, res_mode=res_mode,
                             n_res=len(res_kern))
    in_specs = [pl.BlockSpec((1, Hi, Wi, cin_e), lambda i: (i, 0, 0, 0)),
                pl.BlockSpec((kk, cin_e, cout), lambda i: (0, 0, 0)),
                pl.BlockSpec((1, cout), lambda i: (0, 0))]
    args = [x_kern, w_taps.astype(jnp.bfloat16), b.reshape(1, cout)]
    if gdn_mode is not None:
        in_specs += [pl.BlockSpec((cout, cout), lambda i: (0, 0)),
                     pl.BlockSpec((1, cout), lambda i: (0, 0))]
        args += [gdn["gamma"].T.astype(jnp.bfloat16), gdn["beta"].reshape(1, cout)]
    for r in res_kern:
        in_specs.append(pl.BlockSpec((1, m, cout), lambda i: (i, 0, 0)))
        args.append(r)

    scratch = []
    if pad:
        # (Ho+2, Wo+16, cin): halo rows/cols zero, interior at column 8.
        scratch = [pltpu.VMEM((Ho + 2, Wo + 16, cin_e), jnp.float32)]

    flops = 2 * B * m * kk * cin_e * cout
    if gdn_mode is not None:
        flops += 2 * B * m * cout * cout
    trans = B * m * cout if (gdn_mode is not None or res_mode == "attn") else 0
    bytes_acc = (4 * (x_kern.size + B * m * cout) + 2 * w_taps.size
                 + 4 * sum(int(r.size) for r in res_kern))

    # TODO(synk): add a halo'd H-tile grid axis (manual DMA) so full-resolution
    # images do not need a whole-image VMEM block per grid step.
    out = pl.pallas_call(
        kern,
        out_shape=jax.ShapeDtypeStruct((B, m, cout), jnp.float32),
        grid=(B,),
        in_specs=in_specs,
        out_specs=pl.BlockSpec((1, m, cout), lambda i: (i, 0, 0)),
        scratch_shapes=scratch,
        compiler_params=pltpu.CompilerParams(
            dimension_semantics=("parallel",),
            vmem_limit_bytes=_VMEM_LIMIT),
        cost_estimate=pl.CostEstimate(flops=int(flops), transcendentals=int(trans),
                                      bytes_accessed=int(bytes_acc)),
    )(*args)
    return out


# ----------------------------------------------------------------------------
# Fused Conv2d (+bias +act +(I)GDN +residual/attention epilogue)
# ----------------------------------------------------------------------------

@functools.partial(jax.jit,
                   static_argnames=("stride", "act", "gdn_mode", "res_mode"))
def fused_conv(x, p, *, stride=1, act=None, gdn=None, gdn_mode=None,
               res_mode=None, residuals=()):
    """Conv2d (k in {1,3}, pad=k//2 for k=3, stride in {1,2}) + fused epilogue.

    x: NHWC float32.  p: {"w": (kh,kw,cin,cout), "b": (cout,)}.
    """
    w, b = p["w"], p["b"]
    kh, kw, cin, cout = w.shape
    B, H, W, _ = x.shape

    mode = None
    if stride == 1:
        Ho, Wo = H, W
        if kh == 1:
            mode = "flat"
            x_kern = x.reshape(B, Ho * Wo, cin)
            w_eff = w.reshape(cin, cout)
        elif Wo % 8 == 0:
            mode = "spatial"
            x_kern, pad_in = x, True
            w_taps = w.reshape(9, cin, cout)
        else:
            # tiny-spatial fallback: gather patches in JAX, use the flat path
            mode = "flat"
            xp = jnp.pad(x, ((0, 0), (1, 1), (1, 1), (0, 0)))
            cols = [xp[:, dy:dy + Ho, dx:dx + Wo, :]
                    for dy in range(3) for dx in range(3)]
            x_kern = jnp.concatenate(cols, -1).reshape(B, Ho * Wo, 9 * cin)
            w_eff = w.reshape(9 * cin, cout)
    elif kh == 1:                                   # 1x1, stride 2 (skip convs)
        xs = x[:, ::2, ::2, :]
        Ho, Wo = xs.shape[1], xs.shape[2]
        mode = "flat"
        x_kern = xs.reshape(B, Ho * Wo, cin)
        w_eff = w.reshape(cin, cout)
    else:                                           # 3x3, stride 2, pad 1
        Ho = (H + 2 - 3) // 2 + 1
        Wo = (W + 2 - 3) // 2 + 1
        xp = jnp.pad(x, ((0, 0), (1, 1), (1, 1), (0, 0)))
        # space-to-depth: stack the 4 stride-2 phases on channels so the
        # strided 3x3 becomes a dense 2x2 conv (no strided VMEM loads).
        # TODO(synk): do this in-kernel with strided pl.ds loads.
        phases = []
        for (py, px) in ((0, 0), (0, 1), (1, 0), (1, 1)):
            ph = xp[:, py::2, px::2, :][:, :Ho + 1, :Wo + 1, :]
            ph = jnp.pad(ph, ((0, 0), (0, Ho + 1 - ph.shape[1]),
                              (0, Wo + 1 - ph.shape[2]), (0, 0)))
            phases.append(ph)
        x_sp = jnp.concatenate(phases, -1)          # (B, Ho+1, Wo+1, 4*cin)
        w2 = jnp.zeros((2, 2, 4, cin, cout), w.dtype)
        for qy in range(2):
            for qx in range(2):
                for pi, (py, px) in enumerate(((0, 0), (0, 1), (1, 0), (1, 1))):
                    dy, dx = 2 * qy + py, 2 * qx + px
                    if dy < 3 and dx < 3:
                        w2 = w2.at[qy, qx, pi].set(w[dy, dx])
        if Wo % 8 == 0:
            mode = "spatial"
            x_kern, pad_in = x_sp, False
            w_taps = w2.reshape(4, 4 * cin, cout)
        else:
            mode = "flat"
            cols = [x_sp[:, dy:dy + Ho, dx:dx + Wo, :]
                    for dy in range(2) for dx in range(2)]
            x_kern = jnp.concatenate(cols, -1).reshape(B, Ho * Wo, 16 * cin)
            w_eff = w2.reshape(16 * cin, cout)

    res_kern = tuple(r.reshape(B, Ho * Wo, cout) for r in residuals)

    if mode == "spatial":
        out = _launch_spatial(x_kern, w_taps, b, Ho, Wo, cout, pad=pad_in,
                              act=act, gdn=gdn, gdn_mode=gdn_mode,
                              res_mode=res_mode, res_kern=res_kern)
    else:
        out = _launch_flat(x_kern, w_eff, b, cout, act=act, gdn=gdn,
                           gdn_mode=gdn_mode, res_mode=res_mode,
                           res_kern=res_kern)
    return out.reshape(B, Ho, Wo, cout)


# ----------------------------------------------------------------------------
# Kernel 3: fully fused attention residual unit
#   conv1x1 -> ReLU -> conv3x3 (halo in VMEM scratch) -> ReLU -> conv1x1
#   -> + identity -> ReLU      -- one pallas_call, intermediates never hit HBM.
# ----------------------------------------------------------------------------

def _resunit_kernel(x_ref, w1_ref, b1_ref, w2_ref, b2_ref, w3_ref, b3_ref,
                    o_ref, hpad_ref, *, H, W, C, C2):
    m = H * W
    xm = x_ref[0].reshape(m, C)                                   # (M, C) f32

    h1 = jnp.dot(xm.astype(jnp.bfloat16), w1_ref[...],
                 preferred_element_type=jnp.float32) + b1_ref[...]
    h1 = jnp.maximum(h1, 0.0)

    # zero-padded intermediate held in VMEM (interior at aligned column 8)
    hpad_ref[...] = jnp.zeros_like(hpad_ref)
    hpad_ref[1:H + 1, 8:8 + W, :] = h1.reshape(H, W, C2)

    acc = jnp.zeros((m, C2), jnp.float32) + b2_ref[...]
    t = 0
    for dy in range(3):
        for dx in range(3):
            tapv = hpad_ref[dy:dy + H, 7 + dx:7 + dx + W, :]
            tapv = tapv.reshape(m, C2).astype(jnp.bfloat16)
            acc = acc + jnp.dot(tapv, w2_ref[t], preferred_element_type=jnp.float32)
            t += 1
    h2 = jnp.maximum(acc, 0.0)

    y = jnp.dot(h2.astype(jnp.bfloat16), w3_ref[...],
                preferred_element_type=jnp.float32) + b3_ref[...]
    o_ref[0] = jnp.maximum(xm + y, 0.0)


@jax.jit
def _fused_residual_unit(p, x):
    B, H, W, C = x.shape
    C2 = C // 2
    m = H * W
    w1 = p["c1"]["w"].reshape(C, C2).astype(jnp.bfloat16)
    b1 = p["c1"]["b"].reshape(1, C2)
    w2 = p["c2"]["w"].reshape(9, C2, C2).astype(jnp.bfloat16)
    b2 = p["c2"]["b"].reshape(1, C2)
    w3 = p["c3"]["w"].reshape(C2, C).astype(jnp.bfloat16)
    b3 = p["c3"]["b"].reshape(1, C)

    flops = 2 * B * m * (C * C2 + 9 * C2 * C2 + C2 * C)
    bytes_acc = 8 * B * m * C + 2 * (w1.size + w2.size + w3.size)

    kern = functools.partial(_resunit_kernel, H=H, W=W, C=C, C2=C2)
    out = pl.pallas_call(
        kern,
        out_shape=jax.ShapeDtypeStruct((B, m, C), jnp.float32),
        grid=(B,),
        in_specs=[pl.BlockSpec((1, H, W, C), lambda i: (i, 0, 0, 0)),
                  pl.BlockSpec((C, C2), lambda i: (0, 0)),
                  pl.BlockSpec((1, C2), lambda i: (0, 0)),
                  pl.BlockSpec((9, C2, C2), lambda i: (0, 0, 0)),
                  pl.BlockSpec((1, C2), lambda i: (0, 0)),
                  pl.BlockSpec((C2, C), lambda i: (0, 0)),
                  pl.BlockSpec((1, C), lambda i: (0, 0))],
        out_specs=pl.BlockSpec((1, m, C), lambda i: (i, 0, 0)),
        scratch_shapes=[pltpu.VMEM((H + 2, W + 16, C2), jnp.float32)],
        compiler_params=pltpu.CompilerParams(
            dimension_semantics=("parallel",),
            vmem_limit_bytes=_VMEM_LIMIT),
        cost_estimate=pl.CostEstimate(flops=int(flops), transcendentals=0,
                                      bytes_accessed=int(bytes_acc)),
    )(x, w1, b1, w2, b2, w3, b3)
    return out.reshape(B, H, W, C)


def residual_unit(p, x):
    if x.shape[2] % 8 == 0:
        return _fused_residual_unit(p, x)          # single fused pallas_call
    # tiny-spatial fallback: three fused convs (same semantics)
    h = fused_conv(x, p["c1"], act="relu")
    h = fused_conv(h, p["c2"], act="relu")
    return fused_conv(h, p["c3"], res_mode="add_relu", residuals=(x,))


# ----------------------------------------------------------------------------
# VQ nearest-codebook kernel: distances + argmin only; gather done outside.
# ----------------------------------------------------------------------------

def _vq_kernel(x_ref, e_ref, e2_ref, id_ref):
    """argmin_j (||e_j||^2 - 2 x.e_j)   (||x||^2 is argmin-invariant)."""
    x = x_ref[...].astype(jnp.bfloat16)                       # (TM, D)
    e = e_ref[...]                                            # (CBp, D) bf16
    cbp = e.shape[0]
    xe = jax.lax.dot_general(x, e, (((1,), (1,)), ((), ())),
                             preferred_element_type=jnp.float32)   # (TM, CBp)
    dist = e2_ref[...] - 2.0 * xe
    min_d = jnp.min(dist, axis=-1, keepdims=True)
    ii = jax.lax.broadcasted_iota(jnp.int32, dist.shape, 1)
    # first argmin via float iota (exact for codebook sizes < 2^24)
    ids_f = jnp.min(jnp.where(dist <= min_d, ii.astype(jnp.float32),
                              jnp.float32(cbp)), axis=-1, keepdims=True)
    id_ref[...] = ids_f.astype(jnp.int32)


@jax.jit
def vq_lookup(flat, codebook):
    M, D = flat.shape
    CB = codebook.shape[0]
    CBp = _round_up(CB, 128)                                  # lane-pad the codebook
    e_pad = jnp.pad(codebook, ((0, CBp - CB), (0, 0))).astype(jnp.bfloat16)
    e2 = jnp.concatenate(
        [jnp.sum(codebook * codebook, axis=-1),
         jnp.full((CBp - CB,), 1e30, jnp.float32)]).reshape(1, CBp)

    m8 = _round_up(M, 8)
    tm = min(m8, 512)
    Mp = _round_up(m8, tm)
    flat_p = jnp.pad(flat, ((0, Mp - M), (0, 0)))

    # TODO(synk): for production codebook sizes add a codebook-tile grid axis
    # with a running min/argmin carried in scratch.
    ids = pl.pallas_call(
        _vq_kernel,
        out_shape=jax.ShapeDtypeStruct((Mp, 1), jnp.int32),
        grid=(Mp // tm,),
        in_specs=[pl.BlockSpec((tm, D), lambda i: (i, 0)),
                  pl.BlockSpec((CBp, D), lambda i: (0, 0)),
                  pl.BlockSpec((1, CBp), lambda i: (0, 0))],
        out_specs=pl.BlockSpec((tm, 1), lambda i: (i, 0)),
        compiler_params=pltpu.CompilerParams(
            dimension_semantics=("parallel",),
            vmem_limit_bytes=_VMEM_LIMIT),
        cost_estimate=pl.CostEstimate(flops=int(2 * Mp * CBp * D),
                                      transcendentals=0,
                                      bytes_accessed=int(4 * Mp * (D + 1) + 2 * CBp * D)),
    )(flat_p, e_pad, e2)
    ids = ids[:M, 0]
    q = jnp.take(codebook, ids, axis=0)   # exact codebook rows, gathered outside
    return q, ids


# ----------------------------------------------------------------------------
# Network blocks (elementwise epilogues are fused into the conv kernels)
# ----------------------------------------------------------------------------

def pixel_shuffle(x, r):
    """torch.nn.PixelShuffle semantics, NHWC layout."""
    B, H, W, crr = x.shape
    C = crr // (r * r)
    x = x.reshape(B, H, W, C, r, r)
    x = x.transpose(0, 1, 4, 2, 5, 3)
    return x.reshape(B, H * r, W * r, C)


def attention_block(p, x):
    a = x
    for u in p["a"]:
        a = residual_unit(u, a)
    b = x
    for u in p["b"]:
        b = residual_unit(u, b)
    # fused epilogue: out = x + a * sigmoid(conv1x1(b))
    return fused_conv(b, p["b_out"], res_mode="attn", residuals=(x, a))


def residual_block(p, x):
    h = fused_conv(x, p["conv1"], act="leaky")
    identity = x if p["skip"] is None else fused_conv(x, p["skip"])
    return fused_conv(h, p["conv2"], act="leaky", res_mode="add",
                      residuals=(identity,))


def residual_block_with_stride(p, x):
    h = fused_conv(x, p["conv1"], stride=2, act="leaky")
    identity = fused_conv(x, p["skip"], stride=2)
    return fused_conv(h, p["conv2"], gdn=p["gdn"], gdn_mode="gdn",
                      res_mode="add", residuals=(identity,))


def residual_block_upsample(p, x, r=2):
    # activation is elementwise, so fusing it before the pixel shuffle is valid
    h = pixel_shuffle(fused_conv(x, p["subpel"], act="leaky"), r)
    identity = pixel_shuffle(fused_conv(x, p["upsample"]), r)
    return fused_conv(h, p["conv"], gdn=p["igdn"], gdn_mode="igdn",
                      res_mode="add", residuals=(identity,))


def g_a_forward(p, x):
    x = residual_block_with_stride(p["rbs1"], x)
    x = attention_block(p["attn1"], x)
    x = residual_block(p["rb1"], x)
    x = residual_block_with_stride(p["rbs2"], x)
    x = attention_block(p["attn2"], x)
    x = residual_block(p["rb2"], x)
    x = fused_conv(x, p["conv"], stride=2)
    x = attention_block(p["attn3"], x)
    x = residual_block(p["rb3"], x)
    return x


def g_s_forward(p, y):
    x = attention_block(p["attn1"], y)
    x = residual_block(p["rb1"], x)
    x = residual_block_upsample(p["rbu1"], x, 2)
    x = attention_block(p["attn2"], x)
    x = residual_block(p["rb2"], x)
    x = residual_block_upsample(p["rbu2"], x, 2)
    x = attention_block(p["attn3"], x)
    x = residual_block(p["rb3"], x)
    x = pixel_shuffle(fused_conv(x, p["subpel_out"]), 2)
    return x


# ----------------------------------------------------------------------------
# Cross-entropy / VQ / full forward
# ----------------------------------------------------------------------------

@jax.jit
def calc_cross_entropy(y):
    """GaussianConditional._likelihood(y, scales=1) followed by LowerBound(1e-9)."""
    # TODO(synk): erfc has no documented Pallas/Mosaic lowering; this tiny
    # elementwise op on the latent is computed in plain JAX.
    const = -(2.0 ** -0.5)
    v = jnp.abs(y)
    scales = jnp.maximum(jnp.ones_like(y), 0.11)   # scale lower bound (no-op here)
    upper = 0.5 * jax.scipy.special.erfc(const * ((0.5 - v) / scales))
    lower = 0.5 * jax.scipy.special.erfc(const * ((-0.5 - v) / scales))
    return jnp.maximum(upper - lower, 1e-9)


def vq_forward(codebook, y, commitment_weight=0.25):
    B, H, W, D = y.shape
    flat = y.reshape(-1, D)
    q, ids = vq_lookup(flat, codebook)
    commit = commitment_weight * jnp.mean((jax.lax.stop_gradient(q) - flat) ** 2)
    # TODO(synk): exact `usage` semantics of the repo's modified VectorQuantize
    # are unknown; report the number of distinct codebook entries hit.
    counts = jnp.zeros((codebook.shape[0],), jnp.float32).at[ids].add(1.0)
    usage = jnp.sum((counts > 0).astype(jnp.float32))
    y_hat = flat + jax.lax.stop_gradient(q - flat)   # straight-through (== q fwd)
    return y_hat.reshape(B, H, W, D), ids.reshape(B, H, W), commit, usage


def vqvae_forward(params, x_nchw):
    x = jnp.transpose(x_nchw, (0, 2, 3, 1)).astype(jnp.float32)   # NCHW -> NHWC
    y = g_a_forward(params["g_a"], x)
    ce = calc_cross_entropy(y)
    z_likelihoods = jnp.array(1)
    y_hat, _y_id, commit, usage = vq_forward(params["codebook"], y)
    x_hat = g_s_forward(params["g_s"], y_hat)
    nchw = lambda t: jnp.transpose(t, (0, 3, 1, 2))
    return {"y": nchw(y), "y_hat": nchw(y_hat), "x_hat": nchw(x_hat),
            "likelihoods": z_likelihoods, "commit": commit, "usage": usage,
            "cross": nchw(ce)}


# ----------------------------------------------------------------------------
# Deterministic parameter init (mirrors the module's __init__ shapes)
# ----------------------------------------------------------------------------

class _KeyGen:
    def __init__(self, seed):
        self.key = jax.random.PRNGKey(seed)

    def __call__(self):
        self.key, sub = jax.random.split(self.key)
        return sub


def init_conv(kg, kh, kw, cin, cout):
    std = (kh * kw * cin) ** -0.5
    return {"w": std * jax.random.normal(kg(), (kh, kw, cin, cout), jnp.float32),
            "b": jnp.zeros((cout,), jnp.float32)}


def init_gdn(c):
    # compressai GDN init: beta = 1, gamma = 0.1 * I
    return {"gamma": 0.1 * jnp.eye(c, dtype=jnp.float32),
            "beta": jnp.ones((c,), jnp.float32)}


def init_ru(kg, c):
    return {"c1": init_conv(kg, 1, 1, c, c // 2),
            "c2": init_conv(kg, 3, 3, c // 2, c // 2),
            "c3": init_conv(kg, 1, 1, c // 2, c)}


def init_attention(kg, c):
    return {"a": [init_ru(kg, c) for _ in range(3)],
            "b": [init_ru(kg, c) for _ in range(3)],
            "b_out": init_conv(kg, 1, 1, c, c)}


def init_rb(kg, cin, cout):
    return {"conv1": init_conv(kg, 3, 3, cin, cout),
            "conv2": init_conv(kg, 3, 3, cout, cout),
            "skip": None if cin == cout else init_conv(kg, 1, 1, cin, cout)}


def init_rbs(kg, cin, cout):
    return {"conv1": init_conv(kg, 3, 3, cin, cout),
            "conv2": init_conv(kg, 3, 3, cout, cout),
            "gdn": init_gdn(cout),
            "skip": init_conv(kg, 1, 1, cin, cout)}


def init_rbu(kg, cin, cout, r):
    return {"subpel": init_conv(kg, 3, 3, cin, cout * r * r),
            "conv": init_conv(kg, 3, 3, cout, cout),
            "igdn": init_gdn(cout),
            "upsample": init_conv(kg, 3, 3, cin, cout * r * r)}


def init_vqvae(seed, N, dim, cb_size):
    kg = _KeyGen(seed)
    g_a = {"rbs1": init_rbs(kg, 3, N), "attn1": init_attention(kg, N),
           "rb1": init_rb(kg, N, N), "rbs2": init_rbs(kg, N, N),
           "attn2": init_attention(kg, N), "rb2": init_rb(kg, N, N),
           "conv": init_conv(kg, 3, 3, N, dim), "attn3": init_attention(kg, dim),
           "rb3": init_rb(kg, dim, dim)}
    g_s = {"attn1": init_attention(kg, dim), "rb1": init_rb(kg, dim, dim),
           "rbu1": init_rbu(kg, dim, N, 2), "attn2": init_attention(kg, N),
           "rb2": init_rb(kg, N, N), "rbu2": init_rbu(kg, N, N, 2),
           "attn3": init_attention(kg, N), "rb3": init_rb(kg, N, N),
           "subpel_out": init_conv(kg, 3, 3, N, 3 * 2 * 2)}
    codebook = jax.random.normal(kg(), (cb_size, dim), jnp.float32)
    return {"g_a": g_a, "g_s": g_s, "codebook": codebook}


# ----------------------------------------------------------------------------

if __name__ == "__main__":
    N, DIM, CB_SIZE = 32, 16, 64                 # small, shape-consistent config
    params = init_vqvae(42, N, DIM, CB_SIZE)
    # 32x32 exercises: fused residual units (16x16 / 8x8), tiny-stage fallback
    # (4x4), space-to-depth stride-2 kernels, and the multi-tile flattened path.
    x = jax.random.normal(jax.random.PRNGKey(0), (2, 3, 32, 32), jnp.float32)  # NCHW

    out = vqvae_forward(params, x)
    out = jax.block_until_ready(out)

    assert out["x_hat"].shape == (2, 3, 32, 32)
    assert out["y"].shape == (2, DIM, 4, 4)
    assert out["y_hat"].shape == (2, DIM, 4, 4)
    assert out["cross"].shape == (2, DIM, 4, 4)
    for k in ("x_hat", "y", "y_hat", "cross"):
        assert bool(jnp.all(jnp.isfinite(out[k]))), k
    assert bool(jnp.isfinite(out["commit"])) and bool(jnp.isfinite(out["usage"]))

    print("KERNEL_OK")
</pallas_src>

<mosaic_0001>
module attributes {stable_mosaic.version = 11 : i64} {
  func.func @_spatial_conv_kernel(%arg0: i32, %arg1: memref<1x17x17x12xf32, #tpu.memory_space<vmem>>, %arg2: memref<4x12x32xbf16, #tpu.memory_space<vmem>>, %arg3: memref<1x32xf32, #tpu.memory_space<vmem>>, %arg4: memref<1x256x32xf32, #tpu.memory_space<vmem>>) attributes {dimension_semantics = [#tpu.dimension_semantics<parallel>], iteration_bounds = array<i64: 2>, scalar_prefetch = 0 : i64, scratch_operands = 0 : i64, tpu.core_type = #tpu.core_type<tc>, window_params = [{transform_indices = @transform_0, window_bounds = array<i64: 1, 17, 17, 12>}, {pipeline_mode = #tpu.pipeline_mode<synchronous>, transform_indices = @transform_1, window_bounds = array<i64: 4, 12, 32>}, {pipeline_mode = #tpu.pipeline_mode<synchronous>, transform_indices = @transform_2, window_bounds = array<i64: 1, 32>}, {transform_indices = @transform_3, window_bounds = array<i64: 1, 256, 32>}]} {
    %cst = arith.constant 0.000000e+00 : f32
    %0 = vector.broadcast %cst : f32 to vector<256x32xf32>
    %c0 = arith.constant 0 : index
    %c0_0 = arith.constant 0 : index
    %1 = vector.load %arg3[%c0, %c0_0] : memref<1x32xf32, #tpu.memory_space<vmem>>, vector<1x32xf32>
    %2 = vector.broadcast %1 : vector<1x32xf32> to vector<256x32xf32>
    %3 = arith.addf %0, %2 : vector<256x32xf32>
    %c0_1 = arith.constant 0 : index
    %c0_2 = arith.constant 0 : index
    %c0_3 = arith.constant 0 : index
    %c0_4 = arith.constant 0 : index
    %4 = vector.load %arg1[%c0_1, %c0_2, %c0_3, %c0_4] : memref<1x17x17x12xf32, #tpu.memory_space<vmem>>, vector<1x16x16x12xf32>
    %5 = vector.shape_cast %4 : vector<1x16x16x12xf32> to vector<16x16x12xf32>
    %6 = vector.shape_cast %5 : vector<16x16x12xf32> to vector<256x12xf32>
    %7 = arith.truncf %6 : vector<256x12xf32> to vector<256x12xbf16>
    %c0_5 = arith.constant 0 : index
    %c0_6 = arith.constant 0 : index
    %c0_7 = arith.constant 0 : index
    %8 = vector.load %arg2[%c0_5, %c0_6, %c0_7] : memref<4x12x32xbf16, #tpu.memory_space<vmem>>, vector<1x12x32xbf16>
    %9 = vector.shape_cast %8 : vector<1x12x32xbf16> to vector<12x32xbf16>
    %cst_8 = arith.constant dense<0.000000e+00> : vector<256x32xf32>
    %10 = tpu.matmul %7, %9, %cst_8 {dimension_numbers = #tpu.dot_dimension_numbers<[1], [0], [0], [1], [0, 0, 1, 1], [], []>} : vector<256x12xbf16>, vector<12x32xbf16>, vector<256x32xf32> -> vector<256x32xf32>
    %11 = arith.addf %3, %10 : vector<256x32xf32>
    %c0_9 = arith.constant 0 : index
    %c0_10 = arith.constant 0 : index
    %c1 = arith.constant 1 : index
    %c0_11 = arith.constant 0 : index
    %12 = vector.load %arg1[%c0_9, %c0_10, %c1, %c0_11] : memref<1x17x17x12xf32, #tpu.memory_space<vmem>>, vector<1x16x16x12xf32>
    %13 = vector.shape_cast %12 : vector<1x16x16x12xf32> to vector<16x16x12xf32>
    %14 = vector.shape_cast %13 : vector<16x16x12xf32> to vector<256x12xf32>
    %15 = arith.truncf %14 : vector<256x12xf32> to vector<256x12xbf16>
    %c1_12 = arith.constant 1 : index
    %c0_13 = arith.constant 0 : index
    %c0_14 = arith.constant 0 : index
    %16 = vector.load %arg2[%c1_12, %c0_13, %c0_14] : memref<4x12x32xbf16, #tpu.memory_space<vmem>>, vector<1x12x32xbf16>
    %17 = vector.shape_cast %16 : vector<1x12x32xbf16> to vector<12x32xbf16>
    %cst_15 = arith.constant dense<0.000000e+00> : vector<256x32xf32>
    %18 = tpu.matmul %15, %17, %cst_15 {dimension_numbers = #tpu.dot_dimension_numbers<[1], [0], [0], [1], [0, 0, 1, 1], [], []>} : vector<256x12xbf16>, vector<12x32xbf16>, vector<256x32xf32> -> vector<256x32xf32>
    %19 = arith.addf %11, %18 : vector<256x32xf32>
    %c0_16 = arith.constant 0 : index
    %c1_17 = arith.constant 1 : index
    %c0_18 = arith.constant 0 : index
    %c0_19 = arith.constant 0 : index
    %20 = vector.load %arg1[%c0_16, %c1_17, %c0_18, %c0_19] : memref<1x17x17x12xf32, #tpu.memory_space<vmem>>, vector<1x16x16x12xf32>
    %21 = vector.shape_cast %20 : vector<1x16x16x12xf32> to vector<16x16x12xf32>
    %22 = vector.shape_cast %21 : vector<16x16x12xf32> to vector<256x12xf32>
    %23 = arith.truncf %22 : vector<256x12xf32> to vector<256x12xbf16>
    %c2 = arith.constant 2 : index
    %c0_20 = arith.constant 0 : index
    %c0_21 = arith.constant 0 : index
    %24 = vector.load %arg2[%c2, %c0_20, %c0_21] : memref<4x12x32xbf16, #tpu.memory_space<vmem>>, vector<1x12x32xbf16>
    %25 = vector.shape_cast %24 : vector<1x12x32xbf16> to vector<12x32xbf16>
    %cst_22 = arith.constant dense<0.000000e+00> : vector<256x32xf32>
    %26 = tpu.matmul %23, %25, %cst_22 {dimension_numbers = #tpu.dot_dimension_numbers<[1], [0], [0], [1], [0, 0, 1, 1], [], []>} : vector<256x12xbf16>, vector<12x32xbf16>, vector<256x32xf32> -> vector<256x32xf32>
    %27 = arith.addf %19, %26 : vector<256x32xf32>
    %c0_23 = arith.constant 0 : index
    %c1_24 = arith.constant 1 : index
    %c1_25 = arith.constant 1 : index
    %c0_26 = arith.constant 0 : index
    %28 = vector.load %arg1[%c0_23, %c1_24, %c1_25, %c0_26] : memref<1x17x17x12xf32, #tpu.memory_space<vmem>>, vector<1x16x16x12xf32>
    %29 = vector.shape_cast %28 : vector<1x16x16x12xf32> to vector<16x16x12xf32>
    %30 = vector.shape_cast %29 : vector<16x16x12xf32> to vector<256x12xf32>
    %31 = arith.truncf %30 : vector<256x12xf32> to vector<256x12xbf16>
    %c3 = arith.constant 3 : index
    %c0_27 = arith.constant 0 : index
    %c0_28 = arith.constant 0 : index
    %32 = vector.load %arg2[%c3, %c0_27, %c0_28] : memref<4x12x32xbf16, #tpu.memory_space<vmem>>, vector<1x12x32xbf16>
    %33 = vector.shape_cast %32 : vector<1x12x32xbf16> to vector<12x32xbf16>
    %cst_29 = arith.constant dense<0.000000e+00> : vector<256x32xf32>
    %34 = tpu.matmul %31, %33, %cst_29 {dimension_numbers = #tpu.dot_dimension_numbers<[1], [0], [0], [1], [0, 0, 1, 1], [], []>} : vector<256x12xbf16>, vector<12x32xbf16>, vector<256x32xf32> -> vector<256x32xf32>
    %35 = arith.addf %27, %34 : vector<256x32xf32>
    %cst_30 = arith.constant 0.000000e+00 : f32
    %36 = vector.broadcast %cst_30 : f32 to vector<256x32xf32>
    %37 = arith.cmpf oge, %35, %36 : vector<256x32xf32>
    %cst_31 = arith.constant 0.00999999977 : f32
    %38 = vector.broadcast %cst_31 : f32 to vector<256x32xf32>
    %39 = arith.mulf %38, %35 : vector<256x32xf32>
    %40 = arith.select %37, %35, %39 : vector<256x32xi1>, vector<256x32xf32>
    %c0_32 = arith.constant 0 : index
    %c0_33 = arith.constant 0 : index
    %c0_34 = arith.constant 0 : index
    %41 = vector.load %arg4[%c0_32, %c0_33, %c0_34] : memref<1x256x32xf32, #tpu.memory_space<vmem>>, vector<1x256x32xf32>
    %42 = vector.shape_cast %41 : vector<1x256x32xf32> to vector<256x32xf32>
    %43 = vector.shape_cast %40 : vector<256x32xf32> to vector<1x256x32xf32>
    tpu.vector_store %arg4[%c0_32, %c0_33, %c0_34], %43 {strides = array<i32>} : memref<1x256x32xf32, #tpu.memory_space<vmem>>, vector<1x256x32xf32>,
    return
  }
  func.func @transform_0(%arg0: i32) -> (i32, i32, i32, i32) {
    %c0_i32 = arith.constant 0 : i32
    %c0_i32_0 = arith.constant 0 : i32
    %c0_i32_1 = arith.constant 0 : i32
    %c0_i32_2 = arith.constant 0 : i32
    return %arg0, %c0_i32, %c0_i32_0, %c0_i32_1 : i32, i32, i32, i32
  }
  func.func @transform_1(%arg0: i32) -> (i32, i32, i32) {
    %c0_i32 = arith.constant 0 : i32
    %c0_i32_0 = arith.constant 0 : i32
    %c0_i32_1 = arith.constant 0 : i32
    %c0_i32_2 = arith.constant 0 : i32
    return %c0_i32, %c0_i32_0, %c0_i32_1 : i32, i32, i32
  }
  func.func @transform_2(%arg0: i32) -> (i32, i32) {
    %c0_i32 = arith.constant 0 : i32
    %c0_i32_0 = arith.constant 0 : i32
    %c0_i32_1 = arith.constant 0 : i32
    return %c0_i32, %c0_i32_0 : i32, i32
  }
  func.func @transform_3(%arg0: i32) -> (i32, i32, i32) {
    %c0_i32 = arith.constant 0 : i32
    %c0_i32_0 = arith.constant 0 : i32
    %c0_i32_1 = arith.constant 0 : i32
    return %arg0, %c0_i32, %c0_i32_0 : i32, i32, i32
  }
}

</mosaic_0001>

<bundles_post_ra>
// kernel: fused_conv.1
= control target key start
LH: loop header
LB: loop body
LE: loop exit
PB: predicated region body
PF: predicated region fallthrough
CT: control target
= control target key end

     0   :  { %8 = vsyncpa [#allocation3], 0  ;;  %s2570_s0 = inlined_call_operand.vmem [shape: f32[2,17,17,12], index: 0, kind: input, shape index: {}]   ;;  %s2571_s1 = inlined_call_operand.vmem [shape: bf16[4,12,32], index: 1, kind: input, shape index: {}]   ;;  %s2572_s2 = inlined_call_operand.vmem [shape: f32[1,32], index: 2, kind: input, shape index: {}]   ;;  %s2573_s3 = inlined_call_operand.hbm [shape: f32[2,256,32], index: 3, kind: output, shape index: {}]  }
   0x1   :  { %10 = vsyncpa [#allocation3 + $0x1], 0  ;;  %s2205_s12 = smov 0   ;;  %s2207_s13 = smov 0  }
   0x2   :  { %s2209_s14 = smov 0   ;;  %s2211_s15 = smov 0  }
   0x3 LB: > { %s2226_s16 = sadd.s32 4294967295, %s2180_s15   ;;  %s1585_s17 = sadd.s32 4294967294, %s2180_s15   ;;  %s2180_s15 = sphi %s2211_s15, %s2579_s15   ;;  %s2176_s14 = sphi %s2209_s14, %s2578_s14   ;;  %s2172_s13 = sphi %s2207_s13, %s2577_s13   ;;  %s2168_s12 = sphi %s2205_s12, %s2576_s12  }
   0x4   : > { %s2230_s18 = sadd.s32 1, %s2180_s15   ;;  %s91_s19 = sadd.s32 1, %s2176_s14 }
   0x5   : > { %s88_s20 = ssub.s32 %s2180_s15, %s2230_s18  ;;  %p101_p0 = scmp.ne.s32.totalorder %s2176_s14, %s2172_s13 }
   0x6   : > { %p89_p1 = scmp.eq.s32.totalorder %s88_s20, 0  ;;  %p102_p2 = scmp.eq.s32.totalorder %s2226_s16, 1 }
   0x7   : > { %p107_p3 = scmp.ne.s32.totalorder %s2172_s13, %s2168_s12  ;;  %p108_p4 = scmp.eq.s32.totalorder %s1585_s17, 1 }
   0x8   : > { %s2241_s21 = scalar_select %p89_p1, %s2176_s14, %s91_s19  }
   0x9   : > { %p2243_p5 = por %p102_p2, %p101_p0  ;;  %p2247_p6 = por %p108_p4, %p107_p3 }
   0xa   : > { %p1588_p7 = scmp.ge.s32.totalorder %s2180_s15, 1  ;;  %p140_p8 = scmp.lt.s32.totalorder %s2180_s15, 3 }
   0xc   : > { %p141_p9 = pnand %p1588_p7, %p140_p8 }
   0xd   : > { %v2114_v0 = vld [vmem:[%s2571_s1] sm:$0x3f] (!%p141_p9)   ;;  %vm282_vm0 = vcmask (!%p141_p9), 1045504   ;;  %p164_p10 = scmp.lt.s32.totalorder (!%p141_p9), %s2226_s16, 1  ;;  %v2115_v2 = vld [vmem:[%s2571_s1 + $0x10] sm:$0x3f] (!%p141_p9)  }
   0xe   : > { %144 = sbr.rel (%p141_p9) target bundleno = 387 (0x183), region = 32  ;;  %2068 = vmatprep.subr.msk.bf16.mxu1 (!%p141_p9), %vm282_vm0, %v2114_v0  ;;  %v284_v1 = vsel (!%p141_p9), %vm282_vm0, %v2114_v0, 0  ;;  %v2116_v3 = vld [vmem:[%s2571_s1 + $0x8] sm:$0x3f] (!%p141_p9)   ;;  %2070 = vmatprep.subr.msk.bf16.mxu0 (!%p141_p9), %vm282_vm0, %v2115_v2  ;;  %v885_v4 = vsel (!%p141_p9), %vm282_vm0, %v2115_v2, 0  ;;  %vm233_vm1 = vcmask (!%p141_p9), 97280  }
   0xf   : > { %1805 = vmatpush3.bf16.msra.mxu1 (!%p141_p9), %v284_v1  ;;  %1873 = vmatpush3.bf16.msra.mxu0 (!%p141_p9), %v885_v4  ;;  %v2117_v5 = vld [vmem:[%s2571_s1 + $0x18] sm:$0x3f] (!%p141_p9)   ;;  %v584_v14 = vsel (!%p141_p9), %vm282_vm0, %v2116_v3, 0  ;;  %s161_s17 = sand.u32 (!%p141_p9), 1, %s2172_s13   ;;  %vm1476_vm3 = vcmask (!%p141_p9), 261120   ;;  %s1735_s24 = sshll.u32 (!%p141_p9), %s2226_s16, 12 }
  0x10   : > { %2069 = vmatprep.subr.msk.bf16.mxu1 (!%p141_p9), %vm282_vm0, %v2116_v3  ;;  %2071 = vmatprep.subr.msk.bf16.mxu0 (!%p141_p9), %vm282_vm0, %v2117_v5  ;;  %v1185_v18 = vsel (!%p141_p9), %vm282_vm0, %v2117_v5, 0  ;;  %s1589_s19 = sshll.u32 (!%p141_p9), %s161_s17, 8  ;;  %s2182_s30 = smov (!%p141_p9), [#allocation2]  }
  0x11   : > { %s2424_s20 = scalar_lea.vmem (!%p141_p9), [#allocation2], %s1589_s19 }
  0x12   : > { %s1523_s25 = sshll.u32 (!%p141_p9), %s2424_s20, 4  ;;  %s2519_s25 = int_to_ptr.vmem [resolvable:$true] %s1523_s25 }
  0x13   : > { %s2118_s29 = scalar_lea.vmem (!%p141_p9), %s2519_s25, 4096 }
  0x14   : > { %p2119_p11 = scmp.ne.s32.totalorder (!%p141_p9), %s2519_s25, %s2118_s29 }
  0x15   : > { %s165_s28 = scalar_select %p164_p10, %s2226_s16, 1 }
  0x16   : > { %s2517_s16 = scalar_lea.hbm %s2573_s3, %s1735_s24  ;;  %p2120_p12 = pnand %p2119_p11, %p2243_p5 }
  0x17   : > { %s2072_s4 = smul.u32 408, %s165_s28  ;;  %s2529_s28 = scalar_lea.sflag [#allocation3], %s161_s17 }
  0x18   : > { %p2121_p13 = pneg %p2120_p12 }
  0x19   : > { %s2275_s9 = scalar_lea.vmem %s2570_s0, %s2072_s4  ;;  %s2122_s4 = sshll.u32 %s2182_s30, 4  ;;  %s2123_s4 = int_to_ptr.vmem [resolvable:$false] %s2122_s4 }
  0x1a   : > { %v178_v6 = vld [vmem:[%s2275_s9] sm:$0xff]  ;;  %v179_v7 = vld [vmem:[%s2275_s9 + $0x8] sm:$0xff]  ;;  %v1628_v8 = vld [vmem:[%s2275_s9 + $0x18] sm:$0xff]  ;;  %s2124_s5 = scalar_lea.vmem %s2123_s4, 8192  ;;  %p2125_p0 = scmp.lt.s32.totalorder %s2519_s25, %s2123_s4 }
  0x1b   : > { %v210_v9 = vpack.c.bf16 %v179_v7, %v178_v6  ;;  %v1629_v10 = vld [vmem:[%s2275_s9 + $0x20] sm:$0xff]  ;;  %v1630_v11 = vld [vmem:[%s2275_s9 + $0x30] sm:$0xff]  ;;  %v1631_v12 = vld [vmem:[%s2275_s9 + $0x38] sm:$0xff]  ;;  %p2126_p1 = scmp.lt.s32.totalorder %s2124_s5, %s2118_s29 }
  0x1c   : > { %v812_v13 = vpack.c.bf16 %v1629_v10, %v1628_v8  ;;  %v813_v15 = vpack.c.bf16 %v1631_v12, %v1630_v11  ;;  %v1632_v16 = vld [vmem:[%s2275_s9 + $0x48] sm:$0xff]  ;;  %v1633_v17 = vld [vmem:[%s2275_s9 + $0x50] sm:$0xff]  ;;  %v1634_v20 = vld [vmem:[%s2275_s9 + $0x60] sm:$0xff] }
  0x1d   : > { %1806 = vmatprep.mubr.msk.bf16.mxu1 %vm233_vm1, %v210_v9  ;;  %v814_v19 = vpack.c.bf16 %v1633_v17, %v1632_v16  ;;  %v1635_v21 = vld [vmem:[%s2275_s9 + $0x68] sm:$0xff]  ;;  %v1636_v22 = vld [vmem:[%s2275_s9 + $0x78] sm:$0xff]  ;;  %v1637_v23 = vld [vmem:[%s2275_s9 + $0x80] sm:$0xff]  ;;  %p2127_p2 = por %p2126_p1, %p2125_p0 }
  0x1e   : > { %1874 = vmatprep.mubr.msk.bf16.mxu0 %vm233_vm1, %v812_v13  ;;  %1807 = vmatmul.mubr.msk.bf16.vlgmr.msra.gmra.mrb[0].mxu1 %vm233_vm1, %v812_v13  ;;  %v815_v24 = vpack.c.bf16 %v1635_v21, %v1634_v20  ;;  %v816_v25 = vpack.c.bf16 %v1637_v23, %v1636_v22  ;;  %v1638_v26 = vld [vmem:[%s2275_s9 + $0x90] sm:$0xff]  ;;  %v1639_v27 = vld [vmem:[%s2275_s9 + $0x98] sm:$0xff]  ;;  %v1640_v28 = vld [vmem:[%s2275_s9 + $0xa8] sm:$0xff] }
  0x1f   : > { %1839 = vmatpush3.bf16.msra.mxu1 %v584_v14  ;;  %1875 = vmatmul.mubr.msk.bf16.vlgmr.msra.gmra.mrb[0].mxu0 %vm233_vm1, %v813_v15  ;;  %v1641_v29 = vld [vmem:[%s2275_s9 + $0xb0] sm:$0xff]  ;;  %v817_v30 = vpack.c.bf16 %v1639_v27, %v1638_v26  ;;  %v1642_v32 = vld [vmem:[%s2275_s9 + $0xc0] sm:$0xff]  ;;  %v1643_v33 = vld [vmem:[%s2275_s9 + $0xc8] sm:$0xff]  ;;  %p2128_p3 = pnand %p2127_p2, %p2121_p13 }
  0x20   : > { %1907 = vmatpush3.bf16.msra.mxu0 %v1185_v18  ;;  %1810 = vmatprep.mubr.msk.bf16.mxu1 %vm233_vm1, %v813_v15  ;;  %v818_v31 = vpack.c.bf16 %v1641_v29, %v1640_v28  ;;  %v1644_v34 = vld [vmem:[%s2275_s9 + $0xd8] sm:$0xff]  ;;  %v1645_v35 = vld [vmem:[%s2275_s9 + $0xe0] sm:$0xff]  ;;  %v819_v36 = vpack.c.bf16 %v1643_v33, %v1642_v32  ;;  %v1646_v38 = vld [vmem:[%s2275_s9 + $0xf0] sm:$0xff] }
  0x21   : > { %1878 = vmatprep.mubr.msk.bf16.mxu0 %vm233_vm1, %v814_v19  ;;  %v820_v37 = vpack.c.bf16 %v1645_v35, %v1644_v34  ;;  %v1647_v39 = vld [vmem:[%s2275_s9 + $0xf8] sm:$0xff]  ;;  %v1648_v40 = vld [vmem:[%s2275_s9 + $0x108] sm:$0xff]  ;;  %v1649_v41 = vld [vmem:[%s2275_s9 + $0x110] sm:$0xff] }
  0x22   : > { %v821_v42 = vpack.c.bf16 %v1647_v39, %v1646_v38  ;;  %v822_v43 = vpack.c.bf16 %v1649_v41, %v1648_v40  ;;  %v1650_v44 = vld [vmem:[%s2275_s9 + $0x120] sm:$0xff]  ;;  %v1651_v45 = vld [vmem:[%s2275_s9 + $0x128] sm:$0xff]  ;;  %v1652_v46 = vld [vmem:[%s2275_s9 + $0x138] sm:$0xff] }
  0x23   : > { %v1653_v47 = vld [vmem:[%s2275_s9 + $0x140] sm:$0xff]  ;;  %v823_v48 = vpack.c.bf16 %v1651_v45, %v1650_v44  ;;  %v1654_v50 = vld [vmem:[%s2275_s9 + $0x150] sm:$0xff]  ;;  %v1655_v51 = vld [vmem:[%s2275_s9 + $0x158] sm:$0xff] }
  0x24   : > { %v824_v49 = vpack.c.bf16 %v1653_v47, %v1652_v46  ;;  %v1656_v52 = vld [vmem:[%s2275_s9 + $0x168] sm:$0xff]  ;;  %v1657_v53 = vld [vmem:[%s2275_s9 + $0x170] sm:$0xff]  ;;  %v825_v54 = vpack.c.bf16 %v1655_v51, %v1654_v50  ;;  %v1658_v56 = vld [vmem:[%s2275_s9 + $0x180] sm:$0xff] }
  0x25   : > { %v826_v55 = vpack.c.bf16 %v1657_v53, %v1656_v52  ;;  %v1659_v57 = vld [vmem:[%s2275_s9 + $0x188] sm:$0xff]  ;;  %v1679_v60 = vld [vmem:[%s2275_s9 + $0x19] sm:$0xff]  ;;  %v1681_v1 = vld [vmem:[%s2275_s9 + $0x31] sm:$0xff] }
  0x26   : > { %1811 = vmatmul.mubr.msk.bf16.gmra.mrb[4].mxu1 %vm233_vm1, %v814_v19  ;;  %v479_v58 = vld [vmem:[%s2275_s9 + $0x1] sm:$0xff]  ;;  %v480_v59 = vld [vmem:[%s2275_s9 + $0x9] sm:$0xff]  ;;  %v827_v62 = vpack.c.bf16 %v1659_v57, %v1658_v56  ;;  %v1682_v2 = vld [vmem:[%s2275_s9 + $0x39] sm:$0xff] }
  0x27   : > { %1879 = vmatmul.mubr.msk.bf16.gmra.mrb[4].mxu0 %vm233_vm1, %v815_v24  ;;  %1814 = vmatprep.mubr.msk.bf16.mxu1 %vm233_vm1, %v815_v24  ;;  %v1680_v61 = vld [vmem:[%s2275_s9 + $0x21] sm:$0xff]  ;;  %v511_v63 = vpack.c.bf16 %v480_v59, %v479_v58  ;;  %v1683_v3 = vld [vmem:[%s2275_s9 + $0x49] sm:$0xff]  ;;  %v1684_v4 = vld [vmem:[%s2275_s9 + $0x51] sm:$0xff]  ;;  %v1113_v5 = vpack.c.bf16 %v1682_v2, %v1681_v1 }
  0x28   : > { %1882 = vmatprep.mubr.msk.bf16.mxu0 %vm233_vm1, %v816_v25  ;;  %v1112_v0 = vpack.c.bf16 %v1680_v61, %v1679_v60  ;;  %v1114_v6 = vpack.c.bf16 %v1684_v4, %v1683_v3  ;;  %v1685_v7 = vld [vmem:[%s2275_s9 + $0x61] sm:$0xff]  ;;  %v1686_v8 = vld [vmem:[%s2275_s9 + $0x69] sm:$0xff]  ;;  %v1687_v9 = vld [vmem:[%s2275_s9 + $0x79] sm:$0xff] }
  0x29   : > { %v1688_v10 = vld [vmem:[%s2275_s9 + $0x81] sm:$0xff]  ;;  %v1115_v11 = vpack.c.bf16 %v1686_v8, %v1685_v7  ;;  %v1689_v13 = vld [vmem:[%s2275_s9 + $0x91] sm:$0xff]  ;;  %v1690_v14 = vld [vmem:[%s2275_s9 + $0x99] sm:$0xff] }
  0x2a   : > { %v1116_v12 = vpack.c.bf16 %v1688_v10, %v1687_v9  ;;  %v1691_v15 = vld [vmem:[%s2275_s9 + $0xa9] sm:$0xff]  ;;  %v1692_v16 = vld [vmem:[%s2275_s9 + $0xb1] sm:$0xff]  ;;  %v1117_v17 = vpack.c.bf16 %v1690_v14, %v1689_v13  ;;  %v1693_v19 = vld [vmem:[%s2275_s9 + $0xc1] sm:$0xff] }
  0x2b   : > { %v1118_v18 = vpack.c.bf16 %v1692_v16, %v1691_v15  ;;  %v1694_v20 = vld [vmem:[%s2275_s9 + $0xc9] sm:$0xff]  ;;  %v1695_v21 = vld [vmem:[%s2275_s9 + $0xd9] sm:$0xff]  ;;  %v1696_v22 = vld [vmem:[%s2275_s9 + $0xe1] sm:$0xff] }
  0x2c   : > { %v1119_v23 = vpack.c.bf16 %v1694_v20, %v1693_v19  ;;  %v1120_v24 = vpack.c.bf16 %v1696_v22, %v1695_v21  ;;  %v1698_v26 = vld [vmem:[%s2275_s9 + $0xf9] sm:$0xff]  ;;  %v1699_v27 = vld [vmem:[%s2275_s9 + $0x109] sm:$0xff]  ;;  %v1700_v28 = vld [vmem:[%s2275_s9 + $0x111] sm:$0xff] }
  0x2d   : > { %v1702_v32 = vld [vmem:[%s2275_s9 + $0x129] sm:$0xff]  ;;  %v1703_v33 = vld [vmem:[%s2275_s9 + $0x139] sm:$0xff]  ;;  %v1704_v34 = vld [vmem:[%s2275_s9 + $0x141] sm:$0xff] }
  0x2e   : > { %1815 = vmatmul.mubr.msk.bf16.gmra.mrb[8].mxu1 %vm233_vm1, %v816_v25  ;;  %v1697_v25 = vld [vmem:[%s2275_s9 + $0xf1] sm:$0xff]  ;;  %v1706_v38 = vld [vmem:[%s2275_s9 + $0x159] sm:$0xff]  ;;  %v1707_v39 = vld [vmem:[%s2275_s9 + $0x169] sm:$0xff] }
  0x2f   : > { %1883 = vmatmul.mubr.msk.bf16.gmra.mrb[8].mxu0 %vm233_vm1, %v817_v30  ;;  %1818 = vmatprep.mubr.msk.bf16.mxu1 %vm233_vm1, %v817_v30  ;;  %v1121_v29 = vpack.c.bf16 %v1698_v26, %v1697_v25  ;;  %v1122_v30 = vpack.c.bf16 %v1700_v28, %v1699_v27  ;;  %v1708_v40 = vld [vmem:[%s2275_s9 + $0x171] sm:$0xff]  ;;  %v1710_v44 = vld [vmem:[%s2275_s9 + $0x189] sm:$0xff]  ;;  %v2415_v46 = vld [vmem:[%s2572_s2] ss:$0 sm:$0xff] }
  0x30   : > { %1886 = vmatprep.mubr.msk.bf16.mxu0 %vm233_vm1, %v818_v31 }
  0x36   : > { %1819 = vmatmul.mubr.msk.bf16.gmra.mrb[12].mxu1 %vm233_vm1, %v818_v31  ;;  %v1701_v31 = vld [vmem:[%s2275_s9 + $0x121] sm:$0xff] }
  0x37   : > { %1887 = vmatmul.mubr.msk.bf16.gmra.mrb[12].mxu0 %vm233_vm1, %v819_v36  ;;  %1822 = vmatprep.mubr.msk.bf16.mxu1 %vm233_vm1, %v819_v36  ;;  %v1123_v35 = vpack.c.bf16 %v1702_v32, %v1701_v31  ;;  %v1124_v36 = vpack.c.bf16 %v1704_v34, %v1703_v33 }
  0x38   : > { %1890 = vmatprep.mubr.msk.bf16.mxu0 %vm233_vm1, %v820_v37 }
  0x3e   : > { %1823 = vmatmul.mubr.msk.bf16.gmra.mrb[16].mxu1 %vm233_vm1, %v820_v37  ;;  %v1705_v37 = vld [vmem:[%s2275_s9 + $0x151] sm:$0xff] }
  0x3f   : > { %1891 = vmatmul.mubr.msk.bf16.gmra.mrb[16].mxu0 %vm233_vm1, %v821_v42  ;;  %1826 = vmatprep.mubr.msk.bf16.mxu1 %vm233_vm1, %v821_v42  ;;  %v1125_v41 = vpack.c.bf16 %v1706_v38, %v1705_v37  ;;  %v1126_v42 = vpack.c.bf16 %v1708_v40, %v1707_v39 }
  0x40   : > { %1894 = vmatprep.mubr.msk.bf16.mxu0 %vm233_vm1, %v822_v43 }
  0x46   : > { %1827 = vmatmul.mubr.msk.bf16.gmra.mrb[20].mxu1 %vm233_vm1, %v822_v43  ;;  %v1709_v43 = vld [vmem:[%s2275_s9 + $0x181] sm:$0xff] }
  0x47   : > { %1895 = vmatmul.mubr.msk.bf16.gmra.mrb[20].mxu0 %vm233_vm1, %v823_v48  ;;  %1830 = vmatprep.mubr.msk.bf16.mxu1 %vm233_vm1, %v823_v48  ;;  %v1127_v45 = vpack.c.bf16 %v1710_v44, %v1709_v43 }
  0x48   : > { %1898 = vmatprep.mubr.msk.bf16.mxu0 %vm233_vm1, %v824_v49 }
  0x4e   : > { %1831 = vmatmul.mubr.msk.bf16.gmra.mrb[24].mxu1 %vm233_vm1, %v824_v49 }
  0x4f   : > { %1899 = vmatmul.mubr.msk.bf16.gmra.mrb[24].mxu0 %vm233_vm1, %v825_v54  ;;  %1834 = vmatprep.mubr.msk.bf16.mxu1 %vm233_vm1, %v825_v54 }
  0x50   : > { %1902 = vmatprep.mubr.msk.bf16.mxu0 %vm233_vm1, %v826_v55 }
  0x56   : > { %1835 = vmatmul.mubr.msk.bf16.gmra.mrb[28].mxu1 %vm233_vm1, %v826_v55 }
  0x57   : > { %1903 = vmatmul.mubr.msk.bf16.gmra.mrb[28].mxu0 %vm233_vm1, %v827_v62  ;;  %1840 = vmatprep.mubr.msk.bf16.mxu1 %vm233_vm1, %v511_v63 }
  0x58   : > { %1908 = vmatprep.mubr.msk.bf16.mxu0 %vm233_vm1, %v1112_v0 }
  0x5e   : > { %1841 = vmatmul.mubr.msk.bf16.vlgmr.msra.gmra.mrb[0].mxu1 %vm233_vm1, %v1112_v0 }
  0x5f   : > { %1909 = vmatmul.mubr.msk.bf16.vlgmr.msra.gmra.mrb[0].mxu0 %vm233_vm1, %v1113_v5  ;;  %1844 = vmatprep.mubr.msk.bf16.mxu1 %vm233_vm1, %v1113_v5 }
  0x60   : > { %1912 = vmatprep.mubr.msk.bf16.mxu0 %vm233_vm1, %v1114_v6 }
  0x66   : > { %1845 = vmatmul.mubr.msk.bf16.gmra.mrb[4].mxu1 %vm233_vm1, %v1114_v6 }
  0x67   : > { %1913 = vmatmul.mubr.msk.bf16.gmra.mrb[4].mxu0 %vm233_vm1, %v1115_v11  ;;  %1848 = vmatprep.mubr.msk.bf16.mxu1 %vm233_vm1, %v1115_v11 }
  0x68   : > { %1916 = vmatprep.mubr.msk.bf16.mxu0 %vm233_vm1, %v1116_v12 }
  0x6e   : > { %1849 = vmatmul.mubr.msk.bf16.gmra.mrb[8].mxu1 %vm233_vm1, %v1116_v12 }
  0x6f   : > { %1917 = vmatmul.mubr.msk.bf16.gmra.mrb[8].mxu0 %vm233_vm1, %v1117_v17  ;;  %1852 = vmatprep.mubr.msk.bf16.mxu1 %vm233_vm1, %v1117_v17 }
  0x70   : > { %1920 = vmatprep.mubr.msk.bf16.mxu0 %vm233_vm1, %v1118_v18 }
  0x76   : > { %1853 = vmatmul.mubr.msk.bf16.gmra.mrb[12].mxu1 %vm233_vm1, %v1118_v18 }
  0x77   : > { %1921 = vmatmul.mubr.msk.bf16.gmra.mrb[12].mxu0 %vm233_vm1, %v1119_v23  ;;  %1856 = vmatprep.mubr.msk.bf16.mxu1 %vm233_vm1, %v1119_v23 }
  0x78   : > { %1924 = vmatprep.mubr.msk.bf16.mxu0 %vm233_vm1, %v1120_v24 }
  0x7e   : > { %1857 = vmatmul.mubr.msk.bf16.gmra.mrb[16].mxu1 %vm233_vm1, %v1120_v24 }
  0x7f   : > { %1925 = vmatmul.mubr.msk.bf16.gmra.mrb[16].mxu0 %vm233_vm1, %v1121_v29  ;;  %1860 = vmatprep.mubr.msk.bf16.mxu1 %vm233_vm1, %v1121_v29 }
  0x80   : > { %1928 = vmatprep.mubr.msk.bf16.mxu0 %vm233_vm1, %v1122_v30 }
  0x86   : > { %1861 = vmatmul.mubr.msk.bf16.gmra.mrb[20].mxu1 %vm233_vm1, %v1122_v30 }
  0x87   : > { %1929 = vmatmul.mubr.msk.bf16.gmra.mrb[20].mxu0 %vm233_vm1, %v1123_v35  ;;  %1864 = vmatprep.mubr.msk.bf16.mxu1 %vm233_vm1, %v1123_v35 }
  0x88   : > { %1932 = vmatprep.mubr.msk.bf16.mxu0 %vm233_vm1, %v1124_v36 }
  0x8e   : > { %1865 = vmatmul.mubr.msk.bf16.gmra.mrb[24].mxu1 %vm233_vm1, %v1124_v36 }
  0x8f   : > { %1933 = vmatmul.mubr.msk.bf16.gmra.mrb[24].mxu0 %vm233_vm1, %v1125_v41  ;;  %1868 = vmatprep.mubr.msk.bf16.mxu1 %vm233_vm1, %v1125_v41 }
  0x90   : > { %1936 = vmatprep.mubr.msk.bf16.mxu0 %vm233_vm1, %v1126_v42 }
  0x96   : > { %1869 = vmatmul.mubr.msk.bf16.gmra.mrb[28].mxu1 %vm233_vm1, %v1126_v42 }
  0x97   : > { %1937 = vmatmul.mubr.msk.bf16.gmra.mrb[28].mxu0 %vm233_vm1, %v1127_v45 }
 0x131   : > { %v1842_v47 = vpop.f32.mrb[0].mxu1 }
 0x132   : > { %v1940_v48 = vadd.f32 %v1842_v47, %v2415_v46  ;;  %v1910_v49 = vpop.f32.mrb[0].mxu0  ;;  %v620_v50 = vpop.f32.mrb[1].mxu1 }
 0x133   : > { %v1942_v51 = vadd.f32 %v2415_v46, %v620_v50  ;;  %v1221_v52 = vpop.f32.mrb[1].mxu0  ;;  %v1843_v53 = vpop.f32.mrb[2].mxu1 }
 0x134   : > { %v1941_v54 = vadd.f32 %v1940_v48, %v1910_v49  ;;  %v1944_v55 = vadd.f32 %v1843_v53, %v2415_v46  ;;  %v1911_v56 = vpop.f32.mrb[2].mxu0  ;;  %v623_v57 = vpop.f32.mrb[3].mxu1 }
 0x135   : > { %v1943_v58 = vadd.f32 %v1942_v51, %v1221_v52  ;;  %v1946_v59 = vadd.f32 %v2415_v46, %v623_v57  ;;  %v1224_v60 = vpop.f32.mrb[3].mxu0 }
 0x136   : > { %vm1382_vm2 = vcmp.ge.f32.partialorder %v1941_v54, 0.0  ;;  %v1414_v61 = vmul.f32 0.01, %v1941_v54  ;;  %v1945_v62 = vadd.f32 %v1944_v55, %v1911_v56 }
 0x137   : > { %vm1380_vm4 = vcmp.ge.f32.partialorder %v1943_v58, 0.0  ;;  %v1412_v63 = vmul.f32 0.01, %v1943_v58  ;;  %v1947_v0 = vadd.f32 %v1946_v59, %v1224_v60 }
 0x138   : > { %v1446_v1 = vsel %vm1382_vm2, %v1941_v54, %v1414_v61  ;;  %vm1383_vm5 = vcmp.ge.f32.partialorder %v1945_v62, 0.0  ;;  %v1415_v2 = vmul.f32 0.01, %v1945_v62 }
 0x139   : > { %1479 = vst.msk [vmem:[%s2424_s20 + $0x10] sm:$0xff] %vm1476_vm3, %v1446_v1  ;;  %v1444_v3 = vsel %vm1380_vm4, %v1943_v58, %v1412_v63  ;;  %vm1381_vm6 = vcmp.ge.f32.partialorder %v1947_v0, 0.0  ;;  %v1413_v4 = vmul.f32 0.01, %v1947_v0  ;;  %v1846_v5 = vpop.f32.mrb[4].mxu1 }
 0x13a   : > { %1477 = vst.msk [vmem:[%s2424_s20] sm:$0xff] %vm1476_vm3, %v1444_v3  ;;  %v1447_v6 = vsel %vm1383_vm5, %v1945_v62, %v1415_v2  ;;  %v1948_v7 = vadd.f32 %v1846_v5, %v2415_v46  ;;  %v1914_v8 = vpop.f32.mrb[4].mxu0  ;;  %v636_v9 = vpop.f32.mrb[5].mxu1 }
 0x13b   : > { %1480 = vst.msk [vmem:[%s2424_s20 + $0x18] sm:$0xff] %vm1476_vm3, %v1447_v6  ;;  %v1445_v10 = vsel %vm1381_vm6, %v1947_v0, %v1413_v4  ;;  %v1950_v11 = vadd.f32 %v2415_v46, %v636_v9  ;;  %v1237_v12 = vpop.f32.mrb[5].mxu0  ;;  %v1847_v13 = vpop.f32.mrb[6].mxu1 }
 0x13c   : > { %1478 = vst.msk [vmem:[%s2424_s20 + $0x8] sm:$0xff] %vm1476_vm3, %v1445_v10  ;;  %v1949_v14 = vadd.f32 %v1948_v7, %v1914_v8  ;;  %v1952_v15 = vadd.f32 %v1847_v13, %v2415_v46  ;;  %v1915_v16 = vpop.f32.mrb[6].mxu0  ;;  %v639_v17 = vpop.f32.mrb[7].mxu1 }
 0x13d   : > { %v1951_v18 = vadd.f32 %v1950_v11, %v1237_v12  ;;  %v1954_v19 = vadd.f32 %v2415_v46, %v639_v17  ;;  %v1240_v20 = vpop.f32.mrb[7].mxu0 }
 0x13e   : > { %vm1386_vm7 = vcmp.ge.f32.partialorder %v1949_v14, 0.0  ;;  %v1418_v21 = vmul.f32 0.01, %v1949_v14  ;;  %v1953_v22 = vadd.f32 %v1952_v15, %v1915_v16 }
 0x13f   : > { %vm1384_vm8 = vcmp.ge.f32.partialorder %v1951_v18, 0.0  ;;  %v1416_v23 = vmul.f32 0.01, %v1951_v18  ;;  %v1955_v24 = vadd.f32 %v1954_v19, %v1240_v20 }
 0x140   : > { %v1450_v25 = vsel %vm1386_vm7, %v1949_v14, %v1418_v21  ;;  %vm1387_vm9 = vcmp.ge.f32.partialorder %v1953_v22, 0.0  ;;  %v1419_v26 = vmul.f32 0.01, %v1953_v22 }
 0x141   : > { %1483 = vst.msk [vmem:[%s2424_s20 + $0x30] sm:$0xff] %vm1476_vm3, %v1450_v25  ;;  %v1448_v27 = vsel %vm1384_vm8, %v1951_v18, %v1416_v23  ;;  %vm1385_vm10 = vcmp.ge.f32.partialorder %v1955_v24, 0.0  ;;  %v1417_v28 = vmul.f32 0.01, %v1955_v24  ;;  %v1850_v29 = vpop.f32.mrb[8].mxu1 }
 0x142   : > { %1481 = vst.msk [vmem:[%s2424_s20 + $0x20] sm:$0xff] %vm1476_vm3, %v1448_v27  ;;  %v1451_v30 = vsel %vm1387_vm9, %v1953_v22, %v1419_v26  ;;  %v1956_v31 = vadd.f32 %v1850_v29, %v2415_v46  ;;  %v1918_v32 = vpop.f32.mrb[8].mxu0  ;;  %v652_v33 = vpop.f32.mrb[9].mxu1 }
 0x143   : > { %1484 = vst.msk [vmem:[%s2424_s20 + $0x38] sm:$0xff] %vm1476_vm3, %v1451_v30  ;;  %v1449_v34 = vsel %vm1385_vm10, %v1955_v24, %v1417_v28  ;;  %v1958_v35 = vadd.f32 %v2415_v46, %v652_v33  ;;  %v1253_v36 = vpop.f32.mrb[9].mxu0  ;;  %v1851_v37 = vpop.f32.mrb[10].mxu1 }
 0x144   : > { %1482 = vst.msk [vmem:[%s2424_s20 + $0x28] sm:$0xff] %vm1476_vm3, %v1449_v34  ;;  %v1957_v38 = vadd.f32 %v1956_v31, %v1918_v32  ;;  %v1960_v39 = vadd.f32 %v1851_v37, %v2415_v46  ;;  %v1919_v40 = vpop.f32.mrb[10].mxu0  ;;  %v655_v41 = vpop.f32.mrb[11].mxu1 }
 0x145   : > { %v1959_v42 = vadd.f32 %v1958_v35, %v1253_v36  ;;  %v1962_v43 = vadd.f32 %v2415_v46, %v655_v41  ;;  %v1256_v44 = vpop.f32.mrb[11].mxu0 }
 0x146   : > { %vm1390_vm11 = vcmp.ge.f32.partialorder %v1957_v38, 0.0  ;;  %v1422_v45 = vmul.f32 0.01, %v1957_v38  ;;  %v1961_v47 = vadd.f32 %v1960_v39, %v1919_v40 }
 0x147   : > { %vm1388_vm12 = vcmp.ge.f32.partialorder %v1959_v42, 0.0  ;;  %v1420_v48 = vmul.f32 0.01, %v1959_v42  ;;  %v1963_v49 = vadd.f32 %v1962_v43, %v1256_v44 }
 0x148   : > { %v1454_v50 = vsel %vm1390_vm11, %v1957_v38, %v1422_v45  ;;  %vm1391_vm13 = vcmp.ge.f32.partialorder %v1961_v47, 0.0  ;;  %v1423_v51 = vmul.f32 0.01, %v1961_v47 }
 0x149   : > { %1487 = vst.msk [vmem:[%s2424_s20 + $0x50] sm:$0xff] %vm1476_vm3, %v1454_v50  ;;  %v1452_v52 = vsel %vm1388_vm12, %v1959_v42, %v1420_v48  ;;  %vm1389_vm14 = vcmp.ge.f32.partialorder %v1963_v49, 0.0  ;;  %v1421_v53 = vmul.f32 0.01, %v1963_v49  ;;  %v1854_v54 = vpop.f32.mrb[12].mxu1 }
 0x14a   : > { %1485 = vst.msk [vmem:[%s2424_s20 + $0x40] sm:$0xff] %vm1476_vm3, %v1452_v52  ;;  %v1455_v55 = vsel %vm1391_vm13, %v1961_v47, %v1423_v51  ;;  %v1964_v56 = vadd.f32 %v1854_v54, %v2415_v46  ;;  %v1922_v57 = vpop.f32.mrb[12].mxu0  ;;  %v668_v58 = vpop.f32.mrb[13].mxu1 }
 0x14b   : > { %1488 = vst.msk [vmem:[%s2424_s20 + $0x58] sm:$0xff] %vm1476_vm3, %v1455_v55  ;;  %v1453_v59 = vsel %vm1389_vm14, %v1963_v49, %v1421_v53  ;;  %v1966_v60 = vadd.f32 %v2415_v46, %v668_v58  ;;  %v1269_v61 = vpop.f32.mrb[13].mxu0  ;;  %v1855_v62 = vpop.f32.mrb[14].mxu1 }
 0x14c   : > { %1486 = vst.msk [vmem:[%s2424_s20 + $0x48] sm:$0xff] %vm1476_vm3, %v1453_v59  ;;  %v1965_v63 = vadd.f32 %v1964_v56, %v1922_v57  ;;  %v1968_v0 = vadd.f32 %v1855_v62, %v2415_v46  ;;  %v1923_v1 = vpop.f32.mrb[14].mxu0  ;;  %v671_v2 = vpop.f32.mrb[15].mxu1 }
 0x14d   : > { %v1967_v3 = vadd.f32 %v1966_v60, %v1269_v61  ;;  %v1970_v4 = vadd.f32 %v2415_v46, %v671_v2  ;;  %v1272_v5 = vpop.f32.mrb[15].mxu0 }
 0x14e   : > { %vm1394_vm15 = vcmp.ge.f32.partialorder %v1965_v63, 0.0  ;;  %v1426_v6 = vmul.f32 0.01, %v1965_v63  ;;  %v1969_v7 = vadd.f32 %v1968_v0, %v1923_v1 }
 0x14f   : > { %vm1392_vm0 = vcmp.ge.f32.partialorder %v1967_v3, 0.0  ;;  %v1424_v8 = vmul.f32 0.01, %v1967_v3  ;;  %v1971_v9 = vadd.f32 %v1970_v4, %v1272_v5 }
 0x150   : > { %v1458_v10 = vsel %vm1394_vm15, %v1965_v63, %v1426_v6  ;;  %vm1395_vm1 = vcmp.ge.f32.partialorder %v1969_v7, 0.0  ;;  %v1427_v11 = vmul.f32 0.01, %v1969_v7 }
 0x151   : > { %1491 = vst.msk [vmem:[%s2424_s20 + $0x70] sm:$0xff] %vm1476_vm3, %v1458_v10  ;;  %v1456_v12 = vsel %vm1392_vm0, %v1967_v3, %v1424_v8  ;;  %vm1393_vm2 = vcmp.ge.f32.partialorder %v1971_v9, 0.0  ;;  %v1425_v13 = vmul.f32 0.01, %v1971_v9  ;;  %v1858_v14 = vpop.f32.mrb[16].mxu1 }
 0x152   : > { %1489 = vst.msk [vmem:[%s2424_s20 + $0x60] sm:$0xff] %vm1476_vm3, %v1456_v12  ;;  %v1459_v15 = vsel %vm1395_vm1, %v1969_v7, %v1427_v11  ;;  %v1972_v16 = vadd.f32 %v1858_v14, %v2415_v46  ;;  %v1926_v17 = vpop.f32.mrb[16].mxu0  ;;  %v684_v18 = vpop.f32.mrb[17].mxu1 }
 0x153   : > { %1492 = vst.msk [vmem:[%s2424_s20 + $0x78] sm:$0xff] %vm1476_vm3, %v1459_v15  ;;  %v1457_v19 = vsel %vm1393_vm2, %v1971_v9, %v1425_v13  ;;  %v1974_v20 = vadd.f32 %v2415_v46, %v684_v18  ;;  %v1285_v21 = vpop.f32.mrb[17].mxu0  ;;  %v1859_v22 = vpop.f32.mrb[18].mxu1 }
 0x154   : > { %1490 = vst.msk [vmem:[%s2424_s20 + $0x68] sm:$0xff] %vm1476_vm3, %v1457_v19  ;;  %v1973_v23 = vadd.f32 %v1972_v16, %v1926_v17  ;;  %v1976_v24 = vadd.f32 %v1859_v22, %v2415_v46  ;;  %v1927_v25 = vpop.f32.mrb[18].mxu0  ;;  %v687_v26 = vpop.f32.mrb[19].mxu1 }
 0x155   : > { %v1975_v27 = vadd.f32 %v1974_v20, %v1285_v21  ;;  %v1978_v28 = vadd.f32 %v2415_v46, %v687_v26  ;;  %v1288_v29 = vpop.f32.mrb[19].mxu0 }
 0x156   : > { %vm1398_vm4 = vcmp.ge.f32.partialorder %v1973_v23, 0.0  ;;  %v1430_v30 = vmul.f32 0.01, %v1973_v23  ;;  %v1977_v31 = vadd.f32 %v1976_v24, %v1927_v25 }
 0x157   : > { %vm1396_vm5 = vcmp.ge.f32.partialorder %v1975_v27, 0.0  ;;  %v1428_v32 = vmul.f32 0.01, %v1975_v27  ;;  %v1979_v33 = vadd.f32 %v1978_v28, %v1288_v29 }
 0x158   : > { %v1462_v34 = vsel %vm1398_vm4, %v1973_v23, %v1430_v30  ;;  %vm1399_vm6 = vcmp.ge.f32.partialorder %v1977_v31, 0.0  ;;  %v1431_v35 = vmul.f32 0.01, %v1977_v31 }
 0x159   : > { %1495 = vst.msk [vmem:[%s2424_s20 + $0x90] sm:$0xff] %vm1476_vm3, %v1462_v34  ;;  %v1460_v36 = vsel %vm1396_vm5, %v1975_v27, %v1428_v32  ;;  %vm1397_vm7 = vcmp.ge.f32.partialorder %v1979_v33, 0.0  ;;  %v1429_v37 = vmul.f32 0.01, %v1979_v33  ;;  %v1862_v38 = vpop.f32.mrb[20].mxu1 }
 0x15a   : > { %1493 = vst.msk [vmem:[%s2424_s20 + $0x80] sm:$0xff] %vm1476_vm3, %v1460_v36  ;;  %v1463_v39 = vsel %vm1399_vm6, %v1977_v31, %v1431_v35  ;;  %v1980_v40 = vadd.f32 %v1862_v38, %v2415_v46  ;;  %v1930_v41 = vpop.f32.mrb[20].mxu0  ;;  %v700_v42 = vpop.f32.mrb[21].mxu1 }
 0x15b   : > { %1496 = vst.msk [vmem:[%s2424_s20 + $0x98] sm:$0xff] %vm1476_vm3, %v1463_v39  ;;  %v1461_v43 = vsel %vm1397_vm7, %v1979_v33, %v1429_v37  ;;  %v1982_v44 = vadd.f32 %v2415_v46, %v700_v42  ;;  %v1301_v45 = vpop.f32.mrb[21].mxu0  ;;  %v1863_v47 = vpop.f32.mrb[22].mxu1 }
 0x15c   : > { %1494 = vst.msk [vmem:[%s2424_s20 + $0x88] sm:$0xff] %vm1476_vm3, %v1461_v43  ;;  %v1981_v48 = vadd.f32 %v1980_v40, %v1930_v41  ;;  %v1984_v49 = vadd.f32 %v1863_v47, %v2415_v46  ;;  %v1931_v50 = vpop.f32.mrb[22].mxu0  ;;  %v703_v51 = vpop.f32.mrb[23].mxu1 }
 0x15d   : > { %v1983_v52 = vadd.f32 %v1982_v44, %v1301_v45  ;;  %v1986_v53 = vadd.f32 %v2415_v46, %v703_v51  ;;  %v1304_v54 = vpop.f32.mrb[23].mxu0 }
 0x15e   : > { %vm1402_vm8 = vcmp.ge.f32.partialorder %v1981_v48, 0.0  ;;  %v1434_v55 = vmul.f32 0.01, %v1981_v48  ;;  %v1985_v56 = vadd.f32 %v1984_v49, %v1931_v50 }
 0x15f   : > { %vm1400_vm9 = vcmp.ge.f32.partialorder %v1983_v52, 0.0  ;;  %v1432_v57 = vmul.f32 0.01, %v1983_v52  ;;  %v1987_v58 = vadd.f32 %v1986_v53, %v1304_v54 }
 0x160   : > { %v1466_v59 = vsel %vm1402_vm8, %v1981_v48, %v1434_v55  ;;  %vm1403_vm10 = vcmp.ge.f32.partialorder %v1985_v56, 0.0  ;;  %v1435_v60 = vmul.f32 0.01, %v1985_v56 }
 0x161   : > { %1499 = vst.msk [vmem:[%s2424_s20 + $0xb0] sm:$0xff] %vm1476_vm3, %v1466_v59  ;;  %v1464_v61 = vsel %vm1400_vm9, %v1983_v52, %v1432_v57  ;;  %vm1401_vm11 = vcmp.ge.f32.partialorder %v1987_v58, 0.0  ;;  %v1433_v62 = vmul.f32 0.01, %v1987_v58  ;;  %v1866_v63 = vpop.f32.mrb[24].mxu1 }
 0x162   : > { %1497 = vst.msk [vmem:[%s2424_s20 + $0xa0] sm:$0xff] %vm1476_vm3, %v1464_v61  ;;  %v1467_v0 = vsel %vm1403_vm10, %v1985_v56, %v1435_v60  ;;  %v1988_v1 = vadd.f32 %v1866_v63, %v2415_v46  ;;  %v1934_v2 = vpop.f32.mrb[24].mxu0  ;;  %v716_v3 = vpop.f32.mrb[25].mxu1 }
 0x163   : > { %1500 = vst.msk [vmem:[%s2424_s20 + $0xb8] sm:$0xff] %vm1476_vm3, %v1467_v0  ;;  %v1465_v4 = vsel %vm1401_vm11, %v1987_v58, %v1433_v62  ;;  %v1990_v5 = vadd.f32 %v2415_v46, %v716_v3  ;;  %v1317_v6 = vpop.f32.mrb[25].mxu0  ;;  %v1867_v7 = vpop.f32.mrb[26].mxu1 }
 0x164   : > { %1498 = vst.msk [vmem:[%s2424_s20 + $0xa8] sm:$0xff] %vm1476_vm3, %v1465_v4  ;;  %v1989_v8 = vadd.f32 %v1988_v1, %v1934_v2  ;;  %v1992_v9 = vadd.f32 %v1867_v7, %v2415_v46  ;;  %v1935_v10 = vpop.f32.mrb[26].mxu0  ;;  %v719_v11 = vpop.f32.mrb[27].mxu1 }
 0x165   : > { %v1991_v12 = vadd.f32 %v1990_v5, %v1317_v6  ;;  %v1994_v13 = vadd.f32 %v2415_v46, %v719_v11  ;;  %v1320_v14 = vpop.f32.mrb[27].mxu0 }
 0x166   : > { %vm1406_vm12 = vcmp.ge.f32.partialorder %v1989_v8, 0.0  ;;  %v1438_v15 = vmul.f32 0.01, %v1989_v8  ;;  %v1993_v16 = vadd.f32 %v1992_v9, %v1935_v10 }
 0x167   : > { %vm1404_vm13 = vcmp.ge.f32.partialorder %v1991_v12, 0.0  ;;  %v1436_v17 = vmul.f32 0.01, %v1991_v12  ;;  %v1995_v18 = vadd.f32 %v1994_v13, %v1320_v14 }
 0x168   : > { %v1470_v19 = vsel %vm1406_vm12, %v1989_v8, %v1438_v15  ;;  %vm1407_vm14 = vcmp.ge.f32.partialorder %v1993_v16, 0.0  ;;  %v1439_v20 = vmul.f32 0.01, %v1993_v16 }
 0x169   : > { %1503 = vst.msk [vmem:[%s2424_s20 + $0xd0] sm:$0xff] %vm1476_vm3, %v1470_v19  ;;  %v1468_v21 = vsel %vm1404_vm13, %v1991_v12, %v1436_v17  ;;  %vm1405_vm15 = vcmp.ge.f32.partialorder %v1995_v18, 0.0  ;;  %v1437_v22 = vmul.f32 0.01, %v1995_v18  ;;  %v1870_v23 = vpop.f32.mrb[28].mxu1 }
 0x16a   : > { %1501 = vst.msk [vmem:[%s2424_s20 + $0xc0] sm:$0xff] %vm1476_vm3, %v1468_v21  ;;  %v1471_v24 = vsel %vm1407_vm14, %v1993_v16, %v1439_v20  ;;  %v1996_v25 = vadd.f32 %v1870_v23, %v2415_v46  ;;  %v1938_v26 = vpop.f32.mrb[28].mxu0  ;;  %v732_v27 = vpop.f32.mrb[29].mxu1 }
 0x16b   : > { %1504 = vst.msk [vmem:[%s2424_s20 + $0xd8] sm:$0xff] %vm1476_vm3, %v1471_v24  ;;  %v1469_v28 = vsel %vm1405_vm15, %v1995_v18, %v1437_v22  ;;  %v1998_v29 = vadd.f32 %v2415_v46, %v732_v27  ;;  %v1333_v30 = vpop.f32.mrb[29].mxu0  ;;  %v1871_v31 = vpop.f32.mrb[30].mxu1 }
 0x16c   : > { %1502 = vst.msk [vmem:[%s2424_s20 + $0xc8] sm:$0xff] %vm1476_vm3, %v1469_v28  ;;  %v1997_v32 = vadd.f32 %v1996_v25, %v1938_v26  ;;  %v2000_v33 = vadd.f32 %v1871_v31, %v2415_v46  ;;  %v1939_v34 = vpop.f32.mrb[30].mxu0  ;;  %v735_v35 = vpop.f32.mrb[31].mxu1 }
 0x16d   : > { %v1999_v36 = vadd.f32 %v1998_v29, %v1333_v30  ;;  %v2002_v37 = vadd.f32 %v2415_v46, %v735_v35  ;;  %v1336_v38 = vpop.f32.mrb[31].mxu0 }
 0x16e   : > { %vm1410_vm0 = vcmp.ge.f32.partialorder %v1997_v32, 0.0  ;;  %v1442_v39 = vmul.f32 0.01, %v1997_v32  ;;  %v2001_v40 = vadd.f32 %v2000_v33, %v1939_v34 }
 0x16f   : > { %vm1408_vm1 = vcmp.ge.f32.partialorder %v1999_v36, 0.0  ;;  %v1440_v41 = vmul.f32 0.01, %v1999_v36  ;;  %v2003_v42 = vadd.f32 %v2002_v37, %v1336_v38 }
 0x170   : > { %v1474_v43 = vsel %vm1410_vm0, %v1997_v32, %v1442_v39  ;;  %vm1411_vm2 = vcmp.ge.f32.partialorder %v2001_v40, 0.0  ;;  %v1443_v44 = vmul.f32 0.01, %v2001_v40 }
 0x171   : > { %1507 = vst.msk [vmem:[%s2424_s20 + $0xf0] sm:$0xff] %vm1476_vm3, %v1474_v43  ;;  %v1472_v46 = vsel %vm1408_vm1, %v1999_v36, %v1440_v41  ;;  %vm1409_vm4 = vcmp.ge.f32.partialorder %v2003_v42, 0.0  ;;  %v1441_v45 = vmul.f32 0.01, %v2003_v42 }
 0x172   : > { %1505 = vst.msk [vmem:[%s2424_s20 + $0xe0] sm:$0xff] %vm1476_vm3, %v1472_v46  ;;  %v1475_v47 = vsel %vm1411_vm2, %v2001_v40, %v1443_v44 }
 0x173   : > { %1508 = vst.msk [vmem:[%s2424_s20 + $0xf8] sm:$0xff] %vm1476_vm3, %v1475_v47  ;;  %v1473_v48 = vsel %vm1409_vm4, %v2003_v42, %v1441_v45 }
 0x174   : > { %1506 = vst.msk [vmem:[%s2424_s20 + $0xe8] sm:$0xff] %vm1476_vm3, %v1473_v48 }
 0x175   : > { %2131 = shalt.err (!%p2128_p3)
}
 0x176   : > { %s2132_s6 = scalar_lea.hbm %s2517_s16, 4096  ;;  %s2136_s9 = scalar_lea.hbm %s2573_s3, 8192 }
 0x177   : > { %p2133_p4 = scmp.ne.s32.totalorder %s2517_s16, %s2132_s6  ;;  %p2137_p9 = scmp.lt.u32.totalorder %s2517_s16, %s2573_s3 }
 0x178   : > { %p2138_p10 = scmp.lt.u32.totalorder %s2136_s9, %s2132_s6  ;;  %p2140_p12 = scmp.lt.u32.totalorder %s2132_s6, %s2517_s16 }
 0x179   : > { %p2134_p7 = pnand %p2133_p4, %p2243_p5 }
 0x17a   : > { %p2139_p11 = por %p2138_p10, %p2137_p9 }
 0x17b   : > { %p2135_p8 = pneg %p2134_p7 }
 0x17c   : > { %p2141_p13 = por %p2140_p12, %p2139_p11 }
 0x17e   : > { %p2142_p0 = pnand %p2141_p13, %p2135_p8 }
 0x180   : > { %2145 = shalt.err (!%p2142_p0)
}
 0x181   : > { %s2183_s17 = smov 128   ;;  %s2184_s19 = smov 8  }
 0x182   : > { %2073 = dma.vmem_to_hbm [thread:$0]  (%p2243_p5), %s2519_s25, 4096, %s2517_s16, %s2529_s28, %s2183_s17, %s2183_s17, %s2184_s19  }
 0x183 PF: > { %p2079_p1 = scmp.ge.s32.totalorder %s2180_s15, 2  ;;  %s1538_s20 = sand.u32 1, %s2168_s12  }
 0x184   : > { %s1539_s24 = scalar_lea.sflag [#allocation3], %s1538_s20 }
 0x185   : > { %p2076_p2 = pnand %p2079_p1, %p2247_p6 }
 0x187   : > { %2163 = dma.done.wait (!%p2076_p2), %s1539_s24, 4096  }
 0x188   : > { %2165 = vsyncadd (!%p2076_p2), %s1539_s24, 4294963200  ;;  %p13_p3 = scmp.ge.s32.totalorder %s2230_s18, 4   ;;  %s2576_s12 = smov %s2172_s13 }
 0x189   : > { %s2577_s13 = smov %s2176_s14  ;;  %s2578_s14 = smov %s2241_s21 }
 0x18a   : > { %s2579_s15 = smov %s2230_s18  ;;  %15 = sbr.rel (!%p13_p3) target bundleno = 3 (0x3), region = 71 }
 0x191   :  { %1544 = vsyncpa [#allocation3], 1 }
 0x192   :  { %1546 = vsyncpa [#allocation3 + $0x1], 1 }

</bundles_post_ra>
